<compile_context>
chip_gen: v7x
topology: tpu7x:2x2x1
jax: 0.10.0
libtpu: 0.0.40
codegen_flags: <defaults>
</compile_context>

<pallas_src>
import jax
import jax.numpy as jnp
from jax.experimental import pallas as pl
from jax.experimental.pallas import tpu as pltpu

STATE_DIM = 3
ACTION_DIM = 1
HIDDEN = 256
MAX_ACTION = 1.0
OUT_LANES = 128  # lane-dense output slab width


def actor_kernel(x_ref, w1_ref, b1_ref, w2_ref, b2_ref, w3_ref, b3_ref, out_ref):
    x = x_ref[...]                                    # (Bp, 3)
    w1 = w1_ref[...]                                  # (3, 256)

    # ---- Layer 1: K=3 contraction as 3 broadcast FMAs on the VPU (skip the MXU). ----
    h1 = (x[:, 0:1] * w1[0:1, :]
          + x[:, 1:2] * w1[1:2, :]
          + x[:, 2:3] * w1[2:3, :]
          + b1_ref[...])                              # (Bp, 256)
    h1 = jnp.maximum(h1, 0.0)                         # relu

    # ---- Layer 2: the real matmul, on the MXU with f32 accumulation. ----
    h2 = jnp.dot(h1, w2_ref[...], preferred_element_type=jnp.float32) + b2_ref[...]
    h2 = jnp.maximum(h2, 0.0)                         # relu

    # ---- Layer 3: N=1 -> VPU elementwise mul + XLU lane reduction (no MXU pass). ----
    # w3 is stored as a (1, 256) row vector.
    a = jnp.sum(h2 * w3_ref[...], axis=-1, keepdims=True) + b3_ref[...]   # (Bp, 1)
    act = MAX_ACTION * jnp.tanh(a)                    # tanh on the EUP

    # Lane-dense, unmasked store: broadcast the per-row action across 128 lanes.
    out_ref[...] = jnp.broadcast_to(act, out_ref.shape).astype(out_ref.dtype)


def actor_forward(state, params):
    w1, b1, w2, b2, w3, b3 = params
    batch = state.shape[0]

    # Pad batch to a multiple of 8 (f32 sublane) so every vreg op is unmasked.
    b_pad = max(8, ((batch + 7) // 8) * 8)
    if b_pad != batch:
        state = jnp.pad(state, ((0, b_pad - batch), (0, 0)))

    flops = 2 * b_pad * (STATE_DIM * HIDDEN + HIDDEN * HIDDEN + HIDDEN * ACTION_DIM)
    bytes_accessed = 4 * (
        state.size + w1.size + b1.size + w2.size + b2.size + w3.size + b3.size
        + b_pad * OUT_LANES
    )

    vmem = pltpu.MemorySpace.VMEM
    out = pl.pallas_call(
        actor_kernel,
        out_shape=jax.ShapeDtypeStruct((b_pad, OUT_LANES), jnp.float32),
        in_specs=[
            pl.BlockSpec(memory_space=vmem),  # state (Bp, 3)
            pl.BlockSpec(memory_space=vmem),  # W1    (3, 256)
            pl.BlockSpec(memory_space=vmem),  # b1    (1, 256)
            pl.BlockSpec(memory_space=vmem),  # W2    (256, 256)
            pl.BlockSpec(memory_space=vmem),  # b2    (1, 256)
            pl.BlockSpec(memory_space=vmem),  # W3    (1, 256)  (row vector)
            pl.BlockSpec(memory_space=vmem),  # b3    (1, 1)
        ],
        out_specs=pl.BlockSpec(memory_space=vmem),
        cost_estimate=pl.CostEstimate(
            flops=flops, transcendentals=b_pad, bytes_accessed=bytes_accessed
        ),
    )(state, w1, b1, w2, b2, w3, b3)

    # Slice padded rows and the lane-dense slab back to (batch, action_dim).
    return out[:batch, :ACTION_DIM]


def init_params(key):
    """Deterministic init mimicking PyTorch nn.Linear default: U(-1/sqrt(fan_in), 1/sqrt(fan_in))."""
    ks = jax.random.split(key, 6)

    def linear(kw, kb, fan_in, fan_out):
        bound = 1.0 / jnp.sqrt(fan_in)
        w = jax.random.uniform(kw, (fan_in, fan_out), jnp.float32, -bound, bound)
        b = jax.random.uniform(kb, (1, fan_out), jnp.float32, -bound, bound)
        return w, b

    w1, b1 = linear(ks[0], ks[1], STATE_DIM, HIDDEN)
    w2, b2 = linear(ks[2], ks[3], HIDDEN, HIDDEN)
    w3_col, b3 = linear(ks[4], ks[5], HIDDEN, ACTION_DIM)
    w3 = w3_col.T  # store as (1, 256) row vector for the in-kernel lane reduction
    return (w1, b1, w2, b2, w3, b3)


def actor_reference(state, params):
    w1, b1, w2, b2, w3, b3 = params
    h1 = jnp.maximum(state @ w1 + b1, 0.0)
    h2 = jnp.maximum(h1 @ w2 + b2, 0.0)
    return MAX_ACTION * jnp.tanh(h2 @ w3.T + b3)


if __name__ == "__main__":
    key = jax.random.PRNGKey(0)
    pkey, skey = jax.random.split(key)
    params = init_params(pkey)

    # Small batch of states, shape (batch, state_dim) = (4, 3); first row matches the
    # PyTorch example state [[0.1, 0.2, 0.3]].
    rand_states = jax.random.normal(skey, (3, STATE_DIM), jnp.float32)
    state = jnp.concatenate(
        [jnp.array([[0.1, 0.2, 0.3]], dtype=jnp.float32), rand_states], axis=0
    )

    action = actor_forward(state, params)
    action = jax.block_until_ready(action)

    ref = actor_reference(state, params)
    assert action.shape == (4, ACTION_DIM)
    assert jnp.allclose(action, ref, atol=1e-5, rtol=1e-5)

    print("KERNEL_OK")
</pallas_src>

<mosaic_0001>
module attributes {stable_mosaic.version = 11 : i64} {
  func.func @actor_kernel(%arg0: memref<8x3xf32, #tpu.memory_space<vmem>>, %arg1: memref<3x256xf32, #tpu.memory_space<vmem>>, %arg2: memref<1x256xf32, #tpu.memory_space<vmem>>, %arg3: memref<256x256xf32, #tpu.memory_space<vmem>>, %arg4: memref<1x256xf32, #tpu.memory_space<vmem>>, %arg5: memref<1x256xf32, #tpu.memory_space<vmem>>, %arg6: memref<1x1xf32, #tpu.memory_space<vmem>>, %arg7: memref<8x128xf32, #tpu.memory_space<vmem>>) attributes {dimension_semantics = [], scalar_prefetch = 0 : i64, scratch_operands = 0 : i64, tpu.core_type = #tpu.core_type<tc>} {
    %c0 = arith.constant 0 : index
    %c0_0 = arith.constant 0 : index
    %0 = vector.load %arg0[%c0, %c0_0] : memref<8x3xf32, #tpu.memory_space<vmem>>, vector<8x3xf32>
    %c0_1 = arith.constant 0 : index
    %c0_2 = arith.constant 0 : index
    %1 = vector.load %arg1[%c0_1, %c0_2] : memref<3x256xf32, #tpu.memory_space<vmem>>, vector<3x256xf32>
    %2 = vector.extract_strided_slice %0 {offsets = [0, 0], sizes = [8, 1], strides = [1, 1]} : vector<8x3xf32> to vector<8x1xf32>
    %3 = vector.extract_strided_slice %1 {offsets = [0, 0], sizes = [1, 256], strides = [1, 1]} : vector<3x256xf32> to vector<1x256xf32>
    %4 = vector.broadcast %2 : vector<8x1xf32> to vector<8x256xf32>
    %5 = vector.broadcast %3 : vector<1x256xf32> to vector<8x256xf32>
    %6 = arith.mulf %4, %5 : vector<8x256xf32>
    %7 = vector.extract_strided_slice %0 {offsets = [0, 1], sizes = [8, 1], strides = [1, 1]} : vector<8x3xf32> to vector<8x1xf32>
    %8 = vector.extract_strided_slice %1 {offsets = [1, 0], sizes = [1, 256], strides = [1, 1]} : vector<3x256xf32> to vector<1x256xf32>
    %9 = vector.broadcast %7 : vector<8x1xf32> to vector<8x256xf32>
    %10 = vector.broadcast %8 : vector<1x256xf32> to vector<8x256xf32>
    %11 = arith.mulf %9, %10 : vector<8x256xf32>
    %12 = arith.addf %6, %11 : vector<8x256xf32>
    %13 = vector.extract_strided_slice %0 {offsets = [0, 2], sizes = [8, 1], strides = [1, 1]} : vector<8x3xf32> to vector<8x1xf32>
    %14 = vector.extract_strided_slice %1 {offsets = [2, 0], sizes = [1, 256], strides = [1, 1]} : vector<3x256xf32> to vector<1x256xf32>
    %15 = vector.broadcast %13 : vector<8x1xf32> to vector<8x256xf32>
    %16 = vector.broadcast %14 : vector<1x256xf32> to vector<8x256xf32>
    %17 = arith.mulf %15, %16 : vector<8x256xf32>
    %18 = arith.addf %12, %17 : vector<8x256xf32>
    %c0_3 = arith.constant 0 : index
    %c0_4 = arith.constant 0 : index
    %19 = vector.load %arg2[%c0_3, %c0_4] : memref<1x256xf32, #tpu.memory_space<vmem>>, vector<1x256xf32>
    %20 = vector.broadcast %19 : vector<1x256xf32> to vector<8x256xf32>
    %21 = arith.addf %18, %20 : vector<8x256xf32>
    %cst = arith.constant 0.000000e+00 : f32
    %22 = vector.broadcast %cst : f32 to vector<8x256xf32>
    %23 = arith.maximumf %21, %22 : vector<8x256xf32>
    %c0_5 = arith.constant 0 : index
    %c0_6 = arith.constant 0 : index
    %24 = vector.load %arg3[%c0_5, %c0_6] : memref<256x256xf32, #tpu.memory_space<vmem>>, vector<256x256xf32>
    %cst_7 = arith.constant dense<0.000000e+00> : vector<8x256xf32>
    %25 = tpu.matmul %23, %24, %cst_7 {dimension_numbers = #tpu.dot_dimension_numbers<[1], [0], [0], [1], [0, 0, 1, 1], [], []>} : vector<8x256xf32>, vector<256x256xf32>, vector<8x256xf32> -> vector<8x256xf32>
    %c0_8 = arith.constant 0 : index
    %c0_9 = arith.constant 0 : index
    %26 = vector.load %arg4[%c0_8, %c0_9] : memref<1x256xf32, #tpu.memory_space<vmem>>, vector<1x256xf32>
    %27 = vector.broadcast %26 : vector<1x256xf32> to vector<8x256xf32>
    %28 = arith.addf %25, %27 : vector<8x256xf32>
    %cst_10 = arith.constant 0.000000e+00 : f32
    %29 = vector.broadcast %cst_10 : f32 to vector<8x256xf32>
    %30 = arith.maximumf %28, %29 : vector<8x256xf32>
    %c0_11 = arith.constant 0 : index
    %c0_12 = arith.constant 0 : index
    %31 = vector.load %arg5[%c0_11, %c0_12] : memref<1x256xf32, #tpu.memory_space<vmem>>, vector<1x256xf32>
    %32 = vector.broadcast %31 : vector<1x256xf32> to vector<8x256xf32>
    %33 = arith.mulf %30, %32 : vector<8x256xf32>
    %cst_13 = arith.constant dense<0.000000e+00> : vector<8xf32>
    %34 = vector.multi_reduction <add>, %33, %cst_13 [1] : vector<8x256xf32> to vector<8xf32>
    %35 = vector.shape_cast %34 : vector<8xf32> to vector<8x1xf32>
    %c0_14 = arith.constant 0 : index
    %c0_15 = arith.constant 0 : index
    %36 = vector.load %arg6[%c0_14, %c0_15] : memref<1x1xf32, #tpu.memory_space<vmem>>, vector<1x1xf32>
    %37 = vector.broadcast %36 : vector<1x1xf32> to vector<8x1xf32>
    %38 = arith.addf %35, %37 : vector<8x1xf32>
    %39 = math.tanh %38 : vector<8x1xf32>
    %cst_16 = arith.constant 1.000000e+00 : f32
    %40 = vector.broadcast %cst_16 : f32 to vector<8x1xf32>
    %41 = arith.mulf %40, %39 : vector<8x1xf32>
    %42 = vector.shape_cast %41 : vector<8x1xf32> to vector<8x1xf32>
    %43 = vector.broadcast %42 : vector<8x1xf32> to vector<8x128xf32>
    %c0_17 = arith.constant 0 : index
    %c0_18 = arith.constant 0 : index
    %44 = vector.load %arg7[%c0_17, %c0_18] : memref<8x128xf32, #tpu.memory_space<vmem>>, vector<8x128xf32>
    tpu.vector_store %arg7[%c0_17, %c0_18], %43 {strides = array<i32>} : memref<8x128xf32, #tpu.memory_space<vmem>>, vector<8x128xf32>,
    return
  }
}

</mosaic_0001>

<bundles_post_ra>
// kernel: tpu_custom_call.1
= control target key start
LH: loop header
LB: loop body
LE: loop exit
PB: predicated region body
PF: predicated region fallthrough
CT: control target
= control target key end

     0   :  { %s550_s0 = inlined_call_operand.vmem [shape: f32[8,3], index: 0, kind: input, shape index: {}]   ;;  %s551_s1 = inlined_call_operand.vmem [shape: f32[3,256], index: 1, kind: input, shape index: {}]   ;;  %s552_s2 = inlined_call_operand.vmem [shape: f32[1,256], index: 2, kind: input, shape index: {}]   ;;  %s553_s3 = inlined_call_operand.hbm [shape: f32[256,256], index: 3, kind: input, shape index: {}]   ;;  %s554_s4 = inlined_call_operand.vmem [shape: f32[1,256], index: 4, kind: input, shape index: {}]   ;;  %s555_s5 = inlined_call_operand.vmem [shape: f32[1,256], index: 5, kind: input, shape index: {}]   ;;  %s556_s6 = inlined_call_operand.<no memory space> [shape: f32[1,1], index: 6, kind: input, shape index: {}]   ;;  %s557_s7 = inlined_call_operand.hbm [shape: f32[8,128], index: 7, kind: output, shape index: {}]  }
   0x1   :  { %v12_v0 = vstv %s556_s6 }
   0x2   :  { %13 = vst [vmem:[#allocation2] sm:$0x1] %v12_v0 }
   0x3   :  { %14 = vsyncpa [#allocation4], 0 }
   0x4   :  { %15 = vsyncpa [#allocation5], 0  ;;  %s461_s26 = smov [#allocation3]   ;;  %s413_s30 = scalar_lea.hbm %s553_s3, 8192 }
   0x5   :  { %s27_s27 = sshll.u32 %s461_s26, 4  ;;  %p414_p0 = scmp.ne.s32.totalorder %s553_s3, %s413_s30  ;;  %s28_s27 = int_to_ptr.vmem [resolvable:$true] %s27_s27 }
   0x6   :  { %p417_p1 = scmp.lt.u32.totalorder %s413_s30, %s553_s3 }
   0x8   :  { %p419_p2 = pnand %p417_p1, %p414_p0 }
   0xa   :  { %422 = shalt.err (!%p419_p2)
}
   0xb   :  { %s423_s6 = scalar_lea.vmem %s28_s27, 8192  ;;  %p428_p4 = scmp.lt.s32.totalorder %s28_s27, %s28_s27 }
   0xc   :  { %p424_p3 = scmp.ne.s32.totalorder %s28_s27, %s423_s6  ;;  %p429_p5 = scmp.lt.s32.totalorder %s423_s6, %s423_s6 }
   0xe   :  { %p430_p6 = por %p429_p5, %p428_p4 }
  0x10   :  { %p431_p7 = pnand %p430_p6, %p424_p3 }
  0x12   :  { %434 = shalt.err (!%p431_p7)
}
  0x13   :  { %s462_s12 = smov 256   ;;  %s463_s13 = smov 16  }
  0x14   :  { %33 = dma.hbm_to_vmem [thread:$0]  %s553_s3, 8192, %s28_s27, [#allocation4], %s462_s12, %s462_s12, %s463_s13  }
  0x15   :  { %457 = dma.done.wait [#allocation4], 8192  }
  0x16   :  { %458 = vsyncadd [#allocation4], 4294959104  ;;  %v464_v1 = vmov 0   ;;  %v465_v2 = vmov 2   ;;  %v43_v3 = vld [vmem:[%s550_s0] sm:$0xff]  ;;  %v140_v4 = vld [vmem:[#allocation3 + $0x8] sm:$0xff] }
  0x17   :  { %407 = vset.pattern.permute.xlu0 %v464_v1  ;;  %409 = vset.pattern.permute.xlu1 %v465_v2  ;;  %v142_v5 = vld [vmem:[#allocation3 + $0x18] sm:$0xff]  ;;  %v139_v7 = vld [vmem:[#allocation3] sm:$0xff]  ;;  %v141_v8 = vld [vmem:[#allocation3 + $0x10] sm:$0xff]  ;;  %v466_v18 = vmov 1  }
  0x18   :  { %47 = vperm.xlu0 %407, %v43_v3   ;;  %98 = vperm.xlu1 %409, %v43_v3   ;;  %v336_v6 = vpack.c.bf16 %v142_v5, %v140_v4  ;;  %v144_v9 = vld [vmem:[#allocation3 + $0x28] sm:$0xff]  ;;  %v338_v10 = vpack.c.bf16 %v141_v8, %v139_v7  ;;  %v146_v11 = vld [vmem:[#allocation3 + $0x38] sm:$0xff]  ;;  %v143_v12 = vld [vmem:[#allocation3 + $0x20] sm:$0xff] }
  0x19   :  { %v145_v13 = vld [vmem:[#allocation3 + $0x30] sm:$0xff]  ;;  %v340_v14 = vpack.c.bf16 %v146_v11, %v144_v9  ;;  %v148_v15 = vld [vmem:[#allocation3 + $0x48] sm:$0xff]  ;;  %v150_v16 = vld [vmem:[#allocation3 + $0x58] sm:$0xff] }
  0x1a   :  { %337 = vmatprep.subr.bf16.mxu0 %v336_v6  ;;  %v342_v17 = vpack.c.bf16 %v145_v13, %v143_v12  ;;  %v344_v19 = vpack.c.bf16 %v150_v16, %v148_v15  ;;  %v147_v20 = vld [vmem:[#allocation3 + $0x40] sm:$0xff]  ;;  %v149_v21 = vld [vmem:[#allocation3 + $0x50] sm:$0xff]  ;;  %v152_v22 = vld [vmem:[#allocation3 + $0x68] sm:$0xff] }
  0x1b   :  { %339 = vmatpush1.bf16.msra.mxu0 %v338_v10  ;;  %v154_v23 = vld [vmem:[#allocation3 + $0x78] sm:$0xff]  ;;  %v346_v24 = vpack.c.bf16 %v149_v21, %v147_v20  ;;  %v151_v26 = vld [vmem:[#allocation3 + $0x60] sm:$0xff]  ;;  %v153_v27 = vld [vmem:[#allocation3 + $0x70] sm:$0xff] }
  0x1c   :  { %408 = vset.pattern.permute.xlu0 %v466_v18  ;;  %341 = vmatprep.subr.bf16.mxu0 %v340_v14  ;;  %v348_v25 = vpack.c.bf16 %v154_v23, %v152_v22  ;;  %v156_v28 = vld [vmem:[#allocation3 + $0x88] sm:$0xff]  ;;  %v158_v29 = vld [vmem:[#allocation3 + $0x98] sm:$0xff]  ;;  %v350_v30 = vpack.c.bf16 %v153_v27, %v151_v26  ;;  %v155_v32 = vld [vmem:[#allocation3 + $0x80] sm:$0xff] }
  0x1d   :  { %72 = vperm.xlu0 %408, %v43_v3   ;;  %v352_v31 = vpack.c.bf16 %v158_v29, %v156_v28  ;;  %v157_v33 = vld [vmem:[#allocation3 + $0x90] sm:$0xff]  ;;  %v160_v34 = vld [vmem:[#allocation3 + $0xa8] sm:$0xff]  ;;  %v162_v35 = vld [vmem:[#allocation3 + $0xb8] sm:$0xff] }
  0x1e   :  { %v354_v36 = vpack.c.bf16 %v157_v33, %v155_v32  ;;  %v356_v37 = vpack.c.bf16 %v162_v35, %v160_v34  ;;  %v159_v38 = vld [vmem:[#allocation3 + $0xa0] sm:$0xff]  ;;  %v161_v39 = vld [vmem:[#allocation3 + $0xb0] sm:$0xff]  ;;  %v164_v40 = vld [vmem:[#allocation3 + $0xc8] sm:$0xff] }
  0x1f   :  { %343 = vmatpush1.bf16.msra.mxu0 %v342_v17  ;;  %v166_v41 = vld [vmem:[#allocation3 + $0xd8] sm:$0xff]  ;;  %v358_v42 = vpack.c.bf16 %v161_v39, %v159_v38  ;;  %v163_v44 = vld [vmem:[#allocation3 + $0xc0] sm:$0xff]  ;;  %v165_v45 = vld [vmem:[#allocation3 + $0xd0] sm:$0xff] }
  0x20   :  { %345 = vmatprep.subr.bf16.mxu0 %v344_v19  ;;  %v360_v43 = vpack.c.bf16 %v166_v41, %v164_v40  ;;  %v168_v46 = vld [vmem:[#allocation3 + $0xe8] sm:$0xff]  ;;  %v170_v47 = vld [vmem:[#allocation3 + $0xf8] sm:$0xff]  ;;  %v362_v48 = vpack.c.bf16 %v165_v45, %v163_v44  ;;  %v167_v50 = vld [vmem:[#allocation3 + $0xe0] sm:$0xff] }
  0x21   :  { %410 = vset.pattern.permute.xlu0 %v464_v1  ;;  %v364_v49 = vpack.c.bf16 %v170_v47, %v168_v46  ;;  %v169_v51 = vld [vmem:[#allocation3 + $0xf0] sm:$0xff]  ;;  %v172_v52 = vld [vmem:[#allocation3 + $0x108] sm:$0xff]  ;;  %v174_v53 = vld [vmem:[#allocation3 + $0x118] sm:$0xff] }
  0x22   :  { %v366_v54 = vpack.c.bf16 %v169_v51, %v167_v50  ;;  %v368_v55 = vpack.c.bf16 %v174_v53, %v172_v52  ;;  %v171_v56 = vld [vmem:[#allocation3 + $0x100] sm:$0xff]  ;;  %v173_v57 = vld [vmem:[#allocation3 + $0x110] sm:$0xff]  ;;  %v176_v58 = vld [vmem:[#allocation3 + $0x128] sm:$0xff] }
  0x23   :  { %347 = vmatpush1.bf16.msra.mxu0 %v346_v24  ;;  %v178_v59 = vld [vmem:[#allocation3 + $0x138] sm:$0xff]  ;;  %v370_v60 = vpack.c.bf16 %v173_v57, %v171_v56  ;;  %v175_v62 = vld [vmem:[#allocation3 + $0x120] sm:$0xff]  ;;  %v177_v63 = vld [vmem:[#allocation3 + $0x130] sm:$0xff] }
  0x24   :  { %349 = vmatprep.subr.bf16.mxu0 %v348_v25  ;;  %v372_v61 = vpack.c.bf16 %v178_v59, %v176_v58  ;;  %v180_v0 = vld [vmem:[#allocation3 + $0x148] sm:$0xff]  ;;  %v182_v1 = vld [vmem:[#allocation3 + $0x158] sm:$0xff]  ;;  %v374_v2 = vpack.c.bf16 %v177_v63, %v175_v62  ;;  %v179_v4 = vld [vmem:[#allocation3 + $0x140] sm:$0xff] }
  0x25   :  { %v376_v3 = vpack.c.bf16 %v182_v1, %v180_v0  ;;  %v181_v5 = vld [vmem:[#allocation3 + $0x150] sm:$0xff]  ;;  %v184_v6 = vld [vmem:[#allocation3 + $0x168] sm:$0xff]  ;;  %v186_v7 = vld [vmem:[#allocation3 + $0x178] sm:$0xff] }
  0x26   :  { %v378_v8 = vpack.c.bf16 %v181_v5, %v179_v4  ;;  %v380_v9 = vpack.c.bf16 %v186_v7, %v184_v6  ;;  %v183_v10 = vld [vmem:[#allocation3 + $0x160] sm:$0xff]  ;;  %v185_v11 = vld [vmem:[#allocation3 + $0x170] sm:$0xff]  ;;  %v188_v12 = vld [vmem:[#allocation3 + $0x188] sm:$0xff] }
  0x27   :  { %351 = vmatpush1.bf16.msra.mxu0 %v350_v30  ;;  %v190_v13 = vld [vmem:[#allocation3 + $0x198] sm:$0xff]  ;;  %v382_v14 = vpack.c.bf16 %v185_v11, %v183_v10  ;;  %v187_v16 = vld [vmem:[#allocation3 + $0x180] sm:$0xff]  ;;  %v189_v17 = vld [vmem:[#allocation3 + $0x190] sm:$0xff] }
  0x28   :  { %353 = vmatprep.subr.bf16.mxu0 %v352_v31  ;;  %v384_v15 = vpack.c.bf16 %v190_v13, %v188_v12  ;;  %v192_v18 = vld [vmem:[#allocation3 + $0x1a8] sm:$0xff]  ;;  %v194_v19 = vld [vmem:[#allocation3 + $0x1b8] sm:$0xff]  ;;  %v386_v20 = vpack.c.bf16 %v189_v17, %v187_v16  ;;  %v191_v22 = vld [vmem:[#allocation3 + $0x1a0] sm:$0xff] }
  0x29   :  { %v388_v21 = vpack.c.bf16 %v194_v19, %v192_v18  ;;  %v193_v23 = vld [vmem:[#allocation3 + $0x1b0] sm:$0xff]  ;;  %v196_v24 = vld [vmem:[#allocation3 + $0x1c8] sm:$0xff]  ;;  %v198_v25 = vld [vmem:[#allocation3 + $0x1d8] sm:$0xff] }
  0x2a   :  { %v390_v26 = vpack.c.bf16 %v193_v23, %v191_v22  ;;  %v392_v27 = vpack.c.bf16 %v198_v25, %v196_v24  ;;  %v195_v28 = vld [vmem:[#allocation3 + $0x1c0] sm:$0xff]  ;;  %v197_v29 = vld [vmem:[#allocation3 + $0x1d0] sm:$0xff]  ;;  %v200_v30 = vld [vmem:[#allocation3 + $0x1e8] sm:$0xff] }
  0x2b   :  { %355 = vmatpush1.bf16.msra.mxu0 %v354_v36  ;;  %v202_v31 = vld [vmem:[#allocation3 + $0x1f8] sm:$0xff]  ;;  %v394_v32 = vpack.c.bf16 %v197_v29, %v195_v28  ;;  %v199_v34 = vld [vmem:[#allocation3 + $0x1e0] sm:$0xff]  ;;  %v201_v35 = vld [vmem:[#allocation3 + $0x1f0] sm:$0xff] }
  0x2c   :  { %357 = vmatprep.subr.bf16.mxu0 %v356_v37  ;;  %v396_v33 = vpack.c.bf16 %v202_v31, %v200_v30  ;;  %v398_v36 = vpack.c.bf16 %v201_v35, %v199_v34  ;;  %v51_v37 = vlaneseq  ;;  %v44_v41 = vld [vmem:[%s551_s1] sm:$0x77] }
  0x2d   :  { %v123_v63 = vld [vmem:[%s552_s2] sm:$0x3] }
  0x2e   :  { %v52_v38 = vshrl.u32 %v51_v37, 7  ;;  %v288_v16 = vld [vmem:[%s555_s5] sm:$0x3] }
  0x2f   :  { %359 = vmatpush1.bf16.msra.mxu0 %v358_v42  ;;  %v335_v29 = vld [vmem:[#allocation2] ss:$0 sm:$0xff] }
  0x30   :  { %361 = vmatprep.subr.bf16.mxu0 %v360_v43  ;;  %v53_v39 = vsub.s32 0, %v52_v38  ;;  %v57_v40 = vsub.s32 4, %v52_v38  ;;  %v77_v42 = vsub.s32 1, %v52_v38  ;;  %v81_v43 = vsub.s32 5, %v52_v38 }
  0x31   :  { %v103_v44 = vsub.s32 2, %v52_v38  ;;  %v107_v45 = vsub.s32 6, %v52_v38 }
  0x32   :  { %v54_v46 = vrot.slane %v44_v41, %v53_v39  ;;  %v58_v47 = vrot.slane %v44_v41, %v57_v40  ;;  %v128_v6 = vrot.slane %v123_v63, %v53_v39  ;;  %v132_v7 = vrot.slane %v123_v63, %v77_v42 }
  0x33   :  { %363 = vmatpush1.bf16.msra.mxu0 %v362_v48  ;;  %v78_v48 = vrot.slane %v44_v41, %v77_v42  ;;  %v104_v50 = vrot.slane %v44_v41, %v103_v44  ;;  %v108_v51 = vrot.slane %v44_v41, %v107_v45  ;;  %v297_v23 = vrot.slane %v288_v16, %v77_v42 }
  0x34   :  { %365 = vmatprep.subr.bf16.mxu0 %v364_v49  ;;  %v82_v49 = vrot.slane %v44_v41, %v81_v43  ;;  %v64_v53 = vrot.slane %v54_v46, %v53_v39 }
  0x35   :  { %v114_v57 = vrot.slane %v104_v50, %v103_v44  ;;  %v118_v58 = vrot.slane %v108_v51, %v103_v44 }
  0x36   :  { %v92_v56 = vrot.slane %v82_v49, %v77_v42 }
  0x37   :  { %367 = vmatpush1.bf16.msra.mxu0 %v366_v54  ;;  %v68_v54 = vrot.slane %v58_v47, %v53_v39 }
  0x38   :  { %369 = vmatprep.subr.bf16.mxu0 %v368_v55  ;;  %v88_v55 = vrot.slane %v78_v48, %v77_v42 }
  0x3b   :  { %371 = vmatpush1.bf16.msra.mxu0 %v370_v60 }
  0x3c   :  { %373 = vmatprep.subr.bf16.mxu0 %v372_v61 }
  0x3f   :  { %375 = vmatpush1.bf16.msra.mxu0 %v374_v2 }
  0x40   :  { %377 = vmatprep.subr.bf16.mxu0 %v376_v3 }
  0x43   :  { %379 = vmatpush1.bf16.msra.mxu0 %v378_v8 }
  0x44   :  { %381 = vmatprep.subr.bf16.mxu0 %v380_v9 }
  0x47   :  { %383 = vmatpush1.bf16.msra.mxu0 %v382_v14  ;;  %v203_v14 = vld [vmem:[%s554_s4] sm:$0x3]  ;;  %s467_s4 = smov [#allocation6]  }
  0x48   :  { %385 = vmatprep.subr.bf16.mxu0 %v384_v15  ;;  %v208_v15 = vrot.slane %v203_v14, %v53_v39  ;;  %v212_v17 = vrot.slane %v203_v14, %v77_v42  ;;  %s326_s5 = sshll.u32 %s467_s4, 4  ;;  %s327_s5 = int_to_ptr.vmem [resolvable:$true] %s326_s5 }
  0x49   :  { %s435_s22 = scalar_lea.vmem %s327_s5, 128  ;;  %p440_p9 = scmp.lt.s32.totalorder %s327_s5, %s327_s5 }
  0x4a   :  { %p436_p8 = scmp.ne.s32.totalorder %s327_s5, %s435_s22  ;;  %p441_p10 = scmp.lt.s32.totalorder %s435_s22, %s435_s22 }
  0x4b   :  { %387 = vmatpush1.bf16.msra.mxu0 %v386_v20  ;;  %v293_v20 = vrot.slane %v288_v16, %v53_v39 }
  0x4c   :  { %389 = vmatprep.subr.bf16.mxu0 %v388_v21  ;;  %p442_p11 = por %p441_p10, %p440_p9 }
  0x4e   :  { %p443_p12 = pnand %p442_p11, %p436_p8 }
  0x4f   :  { %391 = vmatpush1.bf16.msra.mxu0 %v390_v26 }
  0x50   :  { %393 = vmatprep.subr.bf16.mxu0 %v392_v27 }
  0x53   :  { %395 = vmatpush1.bf16.msra.mxu0 %v394_v32 }
  0x54   :  { %397 = vmatprep.subr.bf16.mxu0 %v396_v33 }
  0x57   :  { %399 = vmatpush1.bf16.msra.mxu0 %v398_v36 }
  0x97   :  { %v48_v52 = vpop.permute.xlu0 %47  ;;  %v99_v59 = vpop.permute.xlu1 %98 }
  0x98   :  { %v69_v60 = vmul.f32 %v64_v53, %v48_v52  ;;  %v70_v61 = vmul.f32 %v68_v54, %v48_v52  ;;  %v119_v2 = vmul.f32 %v114_v57, %v99_v59  ;;  %v120_v3 = vmul.f32 %v118_v58, %v99_v59 }
  0x9c   :  { %v73_v62 = vpop.permute.xlu0 %72 }
  0x9d   :  { %v93_v0 = vmul.f32 %v88_v55, %v73_v62  ;;  %v94_v1 = vmul.f32 %v92_v56, %v73_v62 }
  0x9f   :  { %v95_v4 = vadd.f32 %v93_v0, %v69_v60  ;;  %v96_v5 = vadd.f32 %v94_v1, %v70_v61 }
  0xa1   :  { %v121_v8 = vadd.f32 %v119_v2, %v95_v4  ;;  %v122_v9 = vadd.f32 %v120_v3, %v96_v5 }
  0xa3   :  { %v136_v10 = vadd.f32 %v132_v7, %v122_v9  ;;  %v135_v11 = vadd.f32 %v128_v6, %v121_v8 }
  0xa5   :  { %v138_v12 = vmax.f32 %v136_v10, 0.0  ;;  %v137_v13 = vmax.f32 %v135_v11, 0.0 }
  0xa7   :  { %279 = vmatprep.mubr.f32.mxu0 %v138_v12 }
  0xa8   :  { %280 = vmatmul.mubr.f32.vlgmr.msra.gmra.mrb[0].mxu0 %v137_v13 }
 0x17b   :  { %v281_v18 = vpop.f32.mrb[0].mxu0 }
 0x17c   :  { %v282_v19 = vadd.f32 %v281_v18, %v208_v15  ;;  %v283_v21 = vpop.f32.mrb[1].mxu0 }
 0x17d   :  { %v284_v22 = vadd.f32 %v283_v21, %v212_v17 }
 0x17e   :  { %v286_v24 = vmax.f32 %v282_v19, 0.0 }
 0x17f   :  { %v287_v25 = vmax.f32 %v284_v22, 0.0 }
 0x180   :  { %v300_v26 = vmul.f32 %v293_v20, %v286_v24 }
 0x181   :  { %v301_v27 = vmul.f32 %v297_v23, %v287_v25 }
 0x183   :  { %v302_v28 = vadd.f32 %v301_v27, %v300_v26 }
 0x185   :  { %303 = vadd.xlane.f32.xlu1 %v302_v28 }
 0x212   :  { %v304_v30 = vpop.xlane.xlu1 %303 }
 0x213   :  { %v312_v31 = vadd.f32 %v335_v29, %v304_v30 }
 0x215   :  { %411 = vtanh.f32 %v312_v31 }
 0x21f   :  { %v412_v32 = vpop.eup %411 }
 0x220   :  { %316 = vperm.xlu0 %410, %v412_v32  }
 0x29f   :  { %v317_v33 = vpop.permute.xlu0 %316 }
 0x2a0   :  { %319 = vst [vmem:[#allocation6] sm:$0xff] %v317_v33 }
 0x2a1   :  { %446 = shalt.err (!%p443_p12)
}
 0x2a2   :  { %s447_s25 = scalar_lea.hbm %s557_s7, 128 }
 0x2a3   :  { %p448_p13 = scmp.ne.s32.totalorder %s557_s7, %s447_s25  ;;  %p451_p0 = scmp.lt.u32.totalorder %s447_s25, %s557_s7 }
 0x2a5   :  { %p453_p1 = pnand %p451_p0, %p448_p13 }
 0x2a7   :  { %456 = shalt.err (!%p453_p1)
}
 0x2a8   :  { %329 = dma.vmem_to_hbm [thread:$0]  %s327_s5, 128, %s557_s7, [#allocation5]  }
 0x2a9   :  { %459 = dma.done.wait [#allocation5], 128  }
 0x2aa   :  { %460 = vsyncadd [#allocation5], 4294967168 }
 0x2ab   :  { %333 = vsyncpa [#allocation4], 1 }
 0x2ac   :  { %334 = vsyncpa [#allocation5], 1 }

</bundles_post_ra>
